<compile_context>
chip_gen: v7x
topology: tpu7x:2x2x1
jax: 0.10.0
libtpu: 0.0.40
codegen_flags: <defaults>
</compile_context>

<pallas_src>
import jax
import jax.numpy as jnp
from jax.experimental import pallas as pl
from jax.experimental.pallas import tpu as pltpu


def actor_kernel(xT_ref, w1bT_ref, whbT_ref, out_ref):
    """Fused actor forward for one batch tile (batch rides the lane axis).

    xT_ref   : (input_dims, TB)            transposed state tile
    w1bT_ref : (fc1_dims, input_dims + 1)  column k = w1[k, :]^T, last col = b1
    whbT_ref : (fc1_dims + 1, 2 * n_outs)  [w_mu | w_sig] rows, last row = bias
    out_ref  : (2 * n_outs, TB)            packed rows [mu ; sigma]
    """
    input_dims = xT_ref.shape[0]
    tb = xT_ref.shape[1]
    fc1_dims = w1bT_ref.shape[0]
    n_outs = out_ref.shape[0] // 2

    x = xT_ref[...]                                           # (in, TB)

    # ---- fc1 (contraction dim = input_dims = 3): VPU broadcast-FMAs.
    # bias column lane-splat: (fc1, 1) -> (fc1, TB)
    h = jnp.broadcast_to(w1bT_ref[:, input_dims:input_dims + 1],
                         (fc1_dims, tb))
    for k in range(input_dims):                               # static unroll
        # (fc1, 1) lane-splat * (1, TB) sublane-splat -> (fc1, TB) outer FMA
        h = h + w1bT_ref[:, k:k + 1] * x[k:k + 1, :]
    h = 2.0 * jnp.tanh(h)                                     # EUP, lane-dense

    # ---- mu / sigma head (K = fc1_dims, 2*n_outs output rows):
    # VPU multiply + XLU sublane reduction, all f32 — no MXU.
    w_head = whbT_ref[:fc1_dims, :]                           # (fc1, 2n)
    b_head = whbT_ref[fc1_dims:, :]                           # (1, 2n)
    rows = []
    for j in range(2 * n_outs):                               # 2n tiny, static
        zj = (jnp.sum(h * w_head[:, j:j + 1], axis=0, keepdims=True)
              + b_head[:, j:j + 1])                           # (1, TB)
        if j >= n_outs:
            # numerically stable softplus (matches torch.nn.Softplus; like
            # torch it may underflow to 0 for very negative inputs).
            zj = jnp.maximum(zj, 0.0) + jnp.log1p(jnp.exp(-jnp.abs(zj)))
        rows.append(zj)
    out_ref[...] = jnp.concatenate(rows, axis=0).astype(out_ref.dtype)


def pack_params(params):
    """Pack the 6 torch-style parameters into 2 buffers laid out for the
    batch-on-lanes kernel.  Done once on the host / wrapper side."""
    fc1_dims = params["w1"].shape[1]
    n_outs = params["wmu"].shape[1]
    w1bT = jnp.concatenate(
        [params["w1"].T, params["b1"].reshape(fc1_dims, 1)], axis=1)      # (fc1, in+1)
    w_head = jnp.concatenate([params["wmu"], params["wsig"]], axis=1)     # (fc1, 2n)
    b_head = jnp.concatenate([params["bmu"].reshape(1, n_outs),
                              params["bsig"].reshape(1, n_outs)], axis=1)  # (1, 2n)
    whbT = jnp.concatenate([w_head, b_head], axis=0)                      # (fc1+1, 2n)
    return {"w1bT": w1bT, "whbT": whbT}


def _batch_tile(B):
    """Lane-dense batch tile: a multiple of 128 that divides B, capped at 2048
    lanes, and giving >= 2 grid steps whenever B allows (v7x megacore)."""
    if B % 128 != 0:
        return B                        # single full-extent block
    n128 = B // 128
    chunks = min(16, n128)              # cap the tile at 2048 lanes
    if n128 >= 2 and chunks == n128:
        chunks = n128 // 2              # force >= 2 grid steps
    while n128 % chunks:
        chunks -= 1                     # every block full — no partial blocks
    return chunks * 128


def actor_forward(state, packed):
    """state: [B, input_dims] f32; packed: dict(w1bT, whbT). Returns (mu, sigma)."""
    B, input_dims = state.shape
    w1bT, whbT = packed["w1bT"], packed["whbT"]
    fc1_dims = w1bT.shape[0]
    two_n = whbT.shape[1]
    n_outs = two_n // 2

    xT = state.T                        # layout plumbing (XLA-side): (in, B)

    tb = _batch_tile(B)
    grid = (pl.cdiv(B, tb),)

    cost = pl.CostEstimate(
        flops=int(2 * B * input_dims * fc1_dims + 2 * B * fc1_dims * two_n),
        transcendentals=int(B * fc1_dims + 2 * B * n_outs),
        bytes_accessed=int(4 * (state.size + B * two_n + w1bT.size + whbT.size)),
    )

    packed_out = pl.pallas_call(
        actor_kernel,
        out_shape=jax.ShapeDtypeStruct((two_n, B), jnp.float32),
        grid=grid,
        in_specs=[
            pl.BlockSpec((input_dims, tb), lambda i: (0, i)),
            pl.BlockSpec(w1bT.shape, lambda i: (0, 0)),   # weights resident
            pl.BlockSpec(whbT.shape, lambda i: (0, 0)),
        ],
        out_specs=pl.BlockSpec((two_n, tb), lambda i: (0, i)),
        compiler_params=pltpu.CompilerParams(
            dimension_semantics=("parallel",)),
        cost_estimate=cost,
    )(xT, w1bT, whbT)                   # (2n, B), lane-dense

    mu = packed_out[:n_outs, :].T       # (B, n_outs)
    sigma = packed_out[n_outs:, :].T    # (B, n_outs)
    return mu, sigma


def actor_forward_reference(state, params):
    """Plain fused JAX path — preferred for tiny online-acting batches where
    pallas_call fixed cost dominates; also used as the correctness oracle."""
    hp = jax.lax.Precision.HIGHEST
    h = 2.0 * jnp.tanh(jnp.dot(state, params["w1"], precision=hp) + params["b1"])
    mu = jnp.dot(h, params["wmu"], precision=hp) + params["bmu"]
    sigma = jax.nn.softplus(jnp.dot(h, params["wsig"], precision=hp) + params["bsig"])
    return mu, sigma


def init_params(key, input_dims, fc1_dims, n_outs):
    """Deterministic init mimicking torch.nn.Linear (uniform(-1/sqrt(fan_in), ...))."""
    k1, k2, k3, k4, k5, k6 = jax.random.split(key, 6)

    def unif(k, shape, fan_in):
        bound = 1.0 / jnp.sqrt(jnp.float32(fan_in))
        return jax.random.uniform(k, shape, jnp.float32, -bound, bound)

    return {
        "w1":   unif(k1, (input_dims, fc1_dims), input_dims),
        "b1":   unif(k2, (1, fc1_dims), input_dims),
        "wmu":  unif(k3, (fc1_dims, n_outs), fc1_dims),
        "bmu":  unif(k4, (1, n_outs), fc1_dims),
        "wsig": unif(k5, (fc1_dims, n_outs), fc1_dims),
        "bsig": unif(k6, (1, n_outs), fc1_dims),
    }


if __name__ == "__main__":
    # Pendulum-v1: observation dim 3, action dim 1.
    input_dims, fc1_dims, n_outs = 3, 32, 1

    key = jax.random.PRNGKey(0)
    k_params, k_s1, k_s2 = jax.random.split(key, 3)

    params = init_params(k_params, input_dims, fc1_dims, n_outs)
    packed = pack_params(params)        # host-side packing, once

    fwd = jax.jit(actor_forward)

    # B = 8: tiny online-acting batch (full-extent block).
    # B = 256: exercises the lane-dense, multi-step "parallel" grid path.
    for B, ks in ((8, k_s1), (256, k_s2)):
        state = jax.random.normal(ks, (B, input_dims), jnp.float32)

        mu, sigma = fwd(state, packed)
        jax.block_until_ready((mu, sigma))

        mu_ref, sigma_ref = actor_forward_reference(state, params)
        assert mu.shape == (B, n_outs) and sigma.shape == (B, n_outs)
        assert jnp.allclose(mu, mu_ref, atol=1e-4, rtol=1e-5), f"mu mismatch B={B}"
        assert jnp.allclose(sigma, sigma_ref, atol=1e-4, rtol=1e-5), f"sigma mismatch B={B}"
        assert bool(jnp.all(sigma > 0)), "sigma must be positive"

    # TODO(synk): torch.distributions.Normal object construction has no Pallas
    # equivalent; the kernel returns the (mu, sigma) distribution parameters.
    print("KERNEL_OK")
</pallas_src>

<mosaic_0001>
module attributes {stable_mosaic.version = 11 : i64} {
  func.func @actor_kernel(%arg0: i32, %arg1: memref<3x8xf32, #tpu.memory_space<vmem>>, %arg2: memref<32x4xf32, #tpu.memory_space<vmem>>, %arg3: memref<33x2xf32, #tpu.memory_space<vmem>>, %arg4: memref<2x8xf32, #tpu.memory_space<vmem>>) attributes {dimension_semantics = [#tpu.dimension_semantics<parallel>], iteration_bounds = array<i64: 1>, scalar_prefetch = 0 : i64, scratch_operands = 0 : i64, tpu.core_type = #tpu.core_type<tc>, window_params = [{transform_indices = @transform_0, window_bounds = array<i64: 3, 8>}, {pipeline_mode = #tpu.pipeline_mode<synchronous>, transform_indices = @transform_1, window_bounds = array<i64: 32, 4>}, {pipeline_mode = #tpu.pipeline_mode<synchronous>, transform_indices = @transform_2, window_bounds = array<i64: 33, 2>}, {transform_indices = @transform_3, window_bounds = array<i64: 2, 8>}]} {
    %c0 = arith.constant 0 : index
    %c0_0 = arith.constant 0 : index
    %0 = vector.load %arg1[%c0, %c0_0] : memref<3x8xf32, #tpu.memory_space<vmem>>, vector<3x8xf32>
    %c0_1 = arith.constant 0 : index
    %c3 = arith.constant 3 : index
    %1 = vector.load %arg2[%c0_1, %c3] : memref<32x4xf32, #tpu.memory_space<vmem>>, vector<32x1xf32>
    %2 = vector.shape_cast %1 : vector<32x1xf32> to vector<32x1xf32>
    %3 = vector.broadcast %2 : vector<32x1xf32> to vector<32x8xf32>
    %c0_2 = arith.constant 0 : index
    %c0_3 = arith.constant 0 : index
    %4 = vector.load %arg2[%c0_2, %c0_3] : memref<32x4xf32, #tpu.memory_space<vmem>>, vector<32x1xf32>
    %5 = vector.extract_strided_slice %0 {offsets = [0, 0], sizes = [1, 8], strides = [1, 1]} : vector<3x8xf32> to vector<1x8xf32>
    %6 = vector.broadcast %4 : vector<32x1xf32> to vector<32x8xf32>
    %7 = vector.broadcast %5 : vector<1x8xf32> to vector<32x8xf32>
    %8 = arith.mulf %6, %7 : vector<32x8xf32>
    %9 = arith.addf %3, %8 : vector<32x8xf32>
    %c0_4 = arith.constant 0 : index
    %c1 = arith.constant 1 : index
    %10 = vector.load %arg2[%c0_4, %c1] : memref<32x4xf32, #tpu.memory_space<vmem>>, vector<32x1xf32>
    %11 = vector.extract_strided_slice %0 {offsets = [1, 0], sizes = [1, 8], strides = [1, 1]} : vector<3x8xf32> to vector<1x8xf32>
    %12 = vector.broadcast %10 : vector<32x1xf32> to vector<32x8xf32>
    %13 = vector.broadcast %11 : vector<1x8xf32> to vector<32x8xf32>
    %14 = arith.mulf %12, %13 : vector<32x8xf32>
    %15 = arith.addf %9, %14 : vector<32x8xf32>
    %c0_5 = arith.constant 0 : index
    %c2 = arith.constant 2 : index
    %16 = vector.load %arg2[%c0_5, %c2] : memref<32x4xf32, #tpu.memory_space<vmem>>, vector<32x1xf32>
    %17 = vector.extract_strided_slice %0 {offsets = [2, 0], sizes = [1, 8], strides = [1, 1]} : vector<3x8xf32> to vector<1x8xf32>
    %18 = vector.broadcast %16 : vector<32x1xf32> to vector<32x8xf32>
    %19 = vector.broadcast %17 : vector<1x8xf32> to vector<32x8xf32>
    %20 = arith.mulf %18, %19 : vector<32x8xf32>
    %21 = arith.addf %15, %20 : vector<32x8xf32>
    %22 = math.tanh %21 : vector<32x8xf32>
    %cst = arith.constant 2.000000e+00 : f32
    %23 = vector.broadcast %cst : f32 to vector<32x8xf32>
    %24 = arith.mulf %23, %22 : vector<32x8xf32>
    %c0_6 = arith.constant 0 : index
    %c0_7 = arith.constant 0 : index
    %25 = vector.load %arg3[%c0_6, %c0_7] : memref<33x2xf32, #tpu.memory_space<vmem>>, vector<32x2xf32>
    %c32 = arith.constant 32 : index
    %c0_8 = arith.constant 0 : index
    %26 = vector.load %arg3[%c32, %c0_8] : memref<33x2xf32, #tpu.memory_space<vmem>>, vector<1x2xf32>
    %27 = vector.extract_strided_slice %25 {offsets = [0, 0], sizes = [32, 1], strides = [1, 1]} : vector<32x2xf32> to vector<32x1xf32>
    %28 = vector.broadcast %27 : vector<32x1xf32> to vector<32x8xf32>
    %29 = arith.mulf %24, %28 : vector<32x8xf32>
    %cst_9 = arith.constant dense<0.000000e+00> : vector<8xf32>
    %30 = vector.multi_reduction <add>, %29, %cst_9 [0] : vector<32x8xf32> to vector<8xf32>
    %31 = vector.shape_cast %30 : vector<8xf32> to vector<1x8xf32>
    %32 = vector.extract_strided_slice %26 {offsets = [0, 0], sizes = [1, 1], strides = [1, 1]} : vector<1x2xf32> to vector<1x1xf32>
    %33 = vector.broadcast %32 : vector<1x1xf32> to vector<1x8xf32>
    %34 = arith.addf %31, %33 : vector<1x8xf32>
    %35 = vector.extract_strided_slice %25 {offsets = [0, 1], sizes = [32, 1], strides = [1, 1]} : vector<32x2xf32> to vector<32x1xf32>
    %36 = vector.broadcast %35 : vector<32x1xf32> to vector<32x8xf32>
    %37 = arith.mulf %24, %36 : vector<32x8xf32>
    %cst_10 = arith.constant dense<0.000000e+00> : vector<8xf32>
    %38 = vector.multi_reduction <add>, %37, %cst_10 [0] : vector<32x8xf32> to vector<8xf32>
    %39 = vector.shape_cast %38 : vector<8xf32> to vector<1x8xf32>
    %40 = vector.extract_strided_slice %26 {offsets = [0, 1], sizes = [1, 1], strides = [1, 1]} : vector<1x2xf32> to vector<1x1xf32>
    %41 = vector.broadcast %40 : vector<1x1xf32> to vector<1x8xf32>
    %42 = arith.addf %39, %41 : vector<1x8xf32>
    %cst_11 = arith.constant 0.000000e+00 : f32
    %43 = vector.broadcast %cst_11 : f32 to vector<1x8xf32>
    %44 = arith.maximumf %42, %43 : vector<1x8xf32>
    %45 = math.absf %42 : vector<1x8xf32>
    %cst_12 = arith.constant 0.000000e+00 : f32
    %46 = vector.broadcast %cst_12 : f32 to vector<1x8xf32>
    %47 = arith.subf %46, %45 : vector<1x8xf32>
    %48 = math.exp %47 : vector<1x8xf32>
    %49 = math.log1p %48 : vector<1x8xf32>
    %50 = arith.addf %44, %49 : vector<1x8xf32>
    %51 = tpu.concatenate %34, %50 in 0 : vector<1x8xf32>, vector<1x8xf32> -> vector<2x8xf32>
    %c0_13 = arith.constant 0 : index
    %c0_14 = arith.constant 0 : index
    %52 = vector.load %arg4[%c0_13, %c0_14] : memref<2x8xf32, #tpu.memory_space<vmem>>, vector<2x8xf32>
    tpu.vector_store %arg4[%c0_13, %c0_14], %51 {strides = array<i32>} : memref<2x8xf32, #tpu.memory_space<vmem>>, vector<2x8xf32>,
    return
  }
  func.func @transform_0(%arg0: i32) -> (i32, i32) {
    %c0_i32 = arith.constant 0 : i32
    %c0_i32_0 = arith.constant 0 : i32
    return %c0_i32, %arg0 : i32, i32
  }
  func.func @transform_1(%arg0: i32) -> (i32, i32) {
    %c0_i32 = arith.constant 0 : i32
    %c0_i32_0 = arith.constant 0 : i32
    %c0_i32_1 = arith.constant 0 : i32
    return %c0_i32, %c0_i32_0 : i32, i32
  }
  func.func @transform_2(%arg0: i32) -> (i32, i32) {
    %c0_i32 = arith.constant 0 : i32
    %c0_i32_0 = arith.constant 0 : i32
    %c0_i32_1 = arith.constant 0 : i32
    return %c0_i32, %c0_i32_0 : i32, i32
  }
  func.func @transform_3(%arg0: i32) -> (i32, i32) {
    %c0_i32 = arith.constant 0 : i32
    %c0_i32_0 = arith.constant 0 : i32
    return %c0_i32, %arg0 : i32, i32
  }
}

</mosaic_0001>

<bundles_post_ra>
// kernel: actor_forward.1
= control target key start
LH: loop header
LB: loop body
LE: loop exit
PB: predicated region body
PF: predicated region fallthrough
CT: control target
= control target key end

     0   :  { %v276_v0 = vmov 0   ;;  %v277_v1 = vmov 3   ;;  %v278_v5 = vmov 1   ;;  %v279_v7 = vmov 2   ;;  %s341_s1 = inlined_call_operand.vmem [shape: f32[32,4], index: 1, kind: input, shape index: {}]   ;;  %s342_s2 = inlined_call_operand.vmem [shape: f32[33,2], index: 2, kind: input, shape index: {}]   ;;  %s343_s0 = inlined_call_operand.vmem [shape: f32[3,8], index: 0, kind: input, shape index: {}]   ;;  %s344_s3 = inlined_call_operand.vmem [shape: f32[2,8], index: 3, kind: output, shape index: {}]  }
   0x1   :  { %248 = vset.pattern.permute.xlu0 %v276_v0  ;;  %249 = vset.pattern.permute.xlu1 %v277_v1  ;;  %v15_v2 = vld [vmem:[%s341_s1] sm:$0xff]  ;;  %v16_v3 = vld [vmem:[%s341_s1 + $0x8] sm:$0xff]  ;;  %v17_v4 = vld [vmem:[%s341_s1 + $0x10] sm:$0xff]  ;;  %v55_v17 = vlaneseq  ;;  %vm160_vm0 = vcmask 64512   ;;  %vm236_vm2 = vcmask 1040384   ;;  %vm238_vm3 = vcmask 58368  }
   0x2   :  { %21 = vperm.xlu1 %249, %v15_v2   ;;  %40 = vperm.xlu0 %248, %v15_v2   ;;  %v18_v6 = vld [vmem:[%s341_s1 + $0x18] sm:$0xff]  ;;  %v131_v8 = vld [vmem:[%s342_s2] sm:$0xff]  ;;  %v132_v10 = vld [vmem:[%s342_s2 + $0x8] sm:$0xff] }
   0x3   :  { %v134_v9 = vld [vmem:[%s342_s2 + $0x18] sm:$0xff]  ;;  %v133_v11 = vld [vmem:[%s342_s2 + $0x10] sm:$0xff]  ;;  %v135_v12 = vld [vmem:[%s342_s2 + $0x20] sm:$0x1]  ;;  %v56_v20 = vshrl.u32 %v55_v17, 7 }
   0x4   :  { %v14_v24 = vld [vmem:[%s343_s0] sm:$0x7] }
   0x5   :  { %v57_v22 = vsub.s32 0, %v56_v20  ;;  %v85_v25 = vsub.s32 1, %v56_v20  ;;  %v113_v27 = vsub.s32 2, %v56_v20 }
   0x6   :  { %26 = vperm.xlu1 %249, %v16_v3   ;;  %44 = vperm.xlu0 %248, %v16_v3  }
   0x7   :  { %v58_v28 = vrot.slane %v14_v24, %v57_v22  ;;  %v86_v30 = vrot.slane %v14_v24, %v85_v25  ;;  %v114_v32 = vrot.slane %v14_v24, %v113_v27 }
   0xa   :  { %250 = vset.pattern.permute.xlu1 %v278_v5  ;;  %48 = vperm.xlu0 %248, %v17_v4  }
   0xb   :  { %68 = vperm.xlu1 %250, %v15_v2  }
   0xe   :  { %251 = vset.pattern.permute.xlu0 %v278_v5 }
   0xf   :  { %252 = vset.pattern.permute.xlu1 %v277_v1  ;;  %72 = vperm.xlu0 %251, %v16_v3  }
  0x10   :  { %31 = vperm.xlu1 %252, %v17_v4  }
  0x13   :  { %76 = vperm.xlu0 %251, %v17_v4  }
  0x14   :  { %253 = vset.pattern.permute.xlu1 %v276_v0 }
  0x15   :  { %52 = vperm.xlu1 %253, %v18_v6  }
  0x17   :  { %255 = vset.pattern.permute.xlu0 %v279_v7 }
  0x18   :  { %100 = vperm.xlu0 %255, %v16_v3  }
  0x19   :  { %254 = vset.pattern.permute.xlu1 %v279_v7 }
  0x1a   :  { %96 = vperm.xlu1 %254, %v15_v2  }
  0x1c   :  { %104 = vperm.xlu0 %255, %v17_v4  }
  0x1e   :  { %256 = vset.pattern.permute.xlu1 %v277_v1 }
  0x1f   :  { %36 = vperm.xlu1 %256, %v18_v6  }
  0x20   :  { %259 = vset.pattern.permute.xlu0 %v278_v5 }
  0x21   :  { %181 = vperm.xlu0 %259, %v131_v8  }
  0x23   :  { %257 = vset.pattern.permute.xlu1 %v278_v5 }
  0x24   :  { %80 = vperm.xlu1 %257, %v18_v6  }
  0x25   :  { %193 = vperm.xlu0 %259, %v134_v9  }
  0x28   :  { %258 = vset.pattern.permute.xlu1 %v279_v7 }
  0x29   :  { %108 = vperm.xlu1 %258, %v18_v6   ;;  %261 = vset.pattern.permute.xlu0 %v276_v0 }
  0x2a   :  { %138 = vperm.xlu0 %261, %v131_v8  }
  0x2d   :  { %260 = vset.pattern.permute.xlu1 %v278_v5 }
  0x2e   :  { %185 = vperm.xlu1 %260, %v132_v10   ;;  %153 = vperm.xlu0 %261, %v134_v9  }
  0x32   :  { %189 = vperm.xlu1 %260, %v133_v11   ;;  %263 = vset.pattern.permute.xlu0 %v278_v5 }
  0x36   :  { %214 = vperm.xlu1 %260, %v135_v12  }
  0x3a   :  { %262 = vset.pattern.permute.xlu1 %v276_v0 }
  0x3b   :  { %143 = vperm.xlu1 %262, %v132_v10  }
  0x3f   :  { %148 = vperm.xlu1 %262, %v133_v11  }
  0x43   :  { %176 = vperm.xlu1 %262, %v135_v12  }
  0x81   :  { %v22_v13 = vpop.permute.xlu1 %21  ;;  %v41_v14 = vpop.permute.xlu0 %40 }
  0x82   :  { %v59_v33 = vmul.f32 %v58_v28, %v41_v14 }
  0x84   :  { %v63_v41 = vadd.f32 %v59_v33, %v22_v13 }
  0x85   :  { %v27_v15 = vpop.permute.xlu1 %26  ;;  %v45_v16 = vpop.permute.xlu0 %44 }
  0x86   :  { %v60_v31 = vmul.f32 %v58_v28, %v45_v16 }
  0x88   :  { %v64_v39 = vadd.f32 %v60_v31, %v27_v15 }
  0x89   :  { %v49_v18 = vpop.permute.xlu0 %48 }
  0x8a   :  { %v69_v19 = vpop.permute.xlu1 %68  ;;  %v61_v37 = vmul.f32 %v58_v28, %v49_v18 }
  0x8b   :  { %v87_v36 = vmul.f32 %v86_v30, %v69_v19 }
  0x8d   :  { %v91_v46 = vadd.f32 %v87_v36, %v63_v41 }
  0x8e   :  { %v73_v21 = vpop.permute.xlu0 %72 }
  0x8f   :  { %v32_v23 = vpop.permute.xlu1 %31  ;;  %v88_v35 = vmul.f32 %v86_v30, %v73_v21 }
  0x90   :  { %v65_v47 = vadd.f32 %v61_v37, %v32_v23 }
  0x91   :  { %v92_v45 = vadd.f32 %v88_v35, %v64_v39 }
  0x92   :  { %v77_v26 = vpop.permute.xlu0 %76 }
  0x93   :  { %v89_v42 = vmul.f32 %v86_v30, %v77_v26 }
  0x94   :  { %v53_v29 = vpop.permute.xlu1 %52 }
  0x95   :  { %v93_v51 = vadd.f32 %v89_v42, %v65_v47  ;;  %v62_v55 = vmul.f32 %v58_v28, %v53_v29 }
  0x97   :  { %v101_v34 = vpop.permute.xlu0 %100 }
  0x98   :  { %v116_v40 = vmul.f32 %v114_v32, %v101_v34 }
  0x99   :  { %v97_v38 = vpop.permute.xlu1 %96 }
  0x9a   :  { %v115_v43 = vmul.f32 %v114_v32, %v97_v38  ;;  %v120_v49 = vadd.f32 %v116_v40, %v92_v45 }
  0x9b   :  { %v105_v44 = vpop.permute.xlu0 %104 }
  0x9c   :  { %v117_v48 = vmul.f32 %v114_v32, %v105_v44  ;;  %v119_v52 = vadd.f32 %v115_v43, %v91_v46  ;;  %264 = vtanh.f32 %v120_v49 }
  0x9e   :  { %v37_v50 = vpop.permute.xlu1 %36  ;;  %v121_v53 = vadd.f32 %v117_v48, %v93_v51  ;;  %266 = vtanh.f32 %v119_v52 }
  0x9f   :  { %v66_v57 = vadd.f32 %v62_v55, %v37_v50 }
  0xa0   :  { %268 = vtanh.f32 %v121_v53  ;;  %v182_v7 = vpop.permute.xlu0 %181 }
  0xa3   :  { %v81_v54 = vpop.permute.xlu1 %80 }
  0xa4   :  { %v90_v56 = vmul.f32 %v86_v30, %v81_v54  ;;  %v194_v15 = vpop.permute.xlu0 %193 }
  0xa6   :  { %v94_v59 = vadd.f32 %v90_v56, %v66_v57  ;;  %v265_v62 = vpop.eup %264 }
  0xa7   :  { %v128_v3 = vmul.f32 2.0, %v265_v62 }
  0xa8   :  { %v109_v58 = vpop.permute.xlu1 %108  ;;  %v267_v63 = vpop.eup %266 }
  0xa9   :  { %v118_v60 = vmul.f32 %v114_v32, %v109_v58  ;;  %v127_v2 = vmul.f32 2.0, %v267_v63  ;;  %v139_v27 = vpop.permute.xlu0 %138 }
  0xaa   :  { %v269_v1 = vpop.eup %268 }
  0xab   :  { %v122_v61 = vadd.f32 %v118_v60, %v94_v59  ;;  %v129_v6 = vmul.f32 2.0, %v269_v1  ;;  %v196_v8 = vmul.f32 %v182_v7, %v127_v2  ;;  %v156_v31 = vmul.f32 %v139_v27, %v127_v2 }
  0xad   :  { %270 = vtanh.f32 %v122_v61  ;;  %v186_v0 = vpop.permute.xlu1 %185  ;;  %v200_v12 = vsel %vm160_vm0, %v196_v8, 0.0  ;;  %v154_v36 = vpop.permute.xlu0 %153  ;;  %v161_v37 = vsel %vm160_vm0, %v156_v31, 0.0 }
  0xae   :  { %v197_v5 = vmul.f32 %v186_v0, %v128_v3 }
  0xb0   :  { %v201_v10 = vsel %vm160_vm0, %v197_v5, 0.0 }
  0xb1   :  { %v190_v4 = vpop.permute.xlu1 %189  ;;  %v202_v16 = vadd.f32 %v201_v10, %v200_v12 }
  0xb2   :  { %v198_v9 = vmul.f32 %v190_v4, %v129_v6 }
  0xb4   :  { %v203_v14 = vsel %vm160_vm0, %v198_v9, 0.0 }
  0xb5   :  { %v215_v18 = vpop.permute.xlu1 %214  ;;  %v204_v19 = vadd.f32 %v203_v14, %v202_v16 }
  0xb7   :  { %v271_v11 = vpop.eup %270 }
  0xb8   :  { %v130_v13 = vmul.f32 2.0, %v271_v11 }
  0xba   :  { %v199_v17 = vmul.f32 %v194_v15, %v130_v13  ;;  %v144_v23 = vpop.permute.xlu1 %143  ;;  %v159_v42 = vmul.f32 %v154_v36, %v130_v13 }
  0xbb   :  { %v157_v30 = vmul.f32 %v144_v23, %v128_v3 }
  0xbc   :  { %v205_v20 = vsel %vm160_vm0, %v199_v17, 0.0  ;;  %v166_v45 = vsel %vm160_vm0, %v159_v42, 0.0 }
  0xbd   :  { %v206_v21 = vadd.f32 %v205_v20, %v204_v19  ;;  %v162_v35 = vsel %vm160_vm0, %v157_v30, 0.0 }
  0xbe   :  { %v149_v28 = vpop.permute.xlu1 %148  ;;  %v163_v40 = vadd.f32 %v162_v35, %v161_v37 }
  0xbf   :  { %v207_v22 = vrot.slane %v206_v21, 4  ;;  %v158_v33 = vmul.f32 %v149_v28, %v129_v6 }
  0xc1   :  { %v208_v24 = vadd.f32 %v207_v22, %v206_v21  ;;  %v164_v39 = vsel %vm160_vm0, %v158_v33, 0.0 }
  0xc2   :  { %v165_v43 = vadd.f32 %v164_v39, %v163_v40  ;;  %v177_v63 = vpop.permute.xlu1 %176 }
  0xc3   :  { %v209_v25 = vrot.slane %v208_v24, 2 }
  0xc4   :  { %v167_v46 = vadd.f32 %v166_v45, %v165_v43 }
  0xc5   :  { %v210_v26 = vadd.f32 %v209_v25, %v208_v24 }
  0xc6   :  { %v168_v47 = vrot.slane %v167_v46, 4 }
  0xc7   :  { %v211_v29 = vrot.slane %v210_v26, 1 }
  0xc8   :  { %v169_v48 = vadd.f32 %v168_v47, %v167_v46 }
  0xc9   :  { %v212_v32 = vadd.f32 %v211_v29, %v210_v26 }
  0xca   :  { %v170_v51 = vrot.slane %v169_v48, 2 }
  0xcb   :  { %v217_v34 = vadd.f32 %v215_v18, %v212_v32 }
  0xcc   :  { %v171_v53 = vadd.f32 %v170_v51, %v169_v48 }
  0xcd   :  { %v219_v38 = vand.u32 2147483647, %v217_v34  ;;  %v218_v60 = vmax.f32 %v217_v34, 0.0 }
  0xce   :  { %v172_v56 = vrot.slane %v171_v53, 1 }
  0xcf   :  { %v220_v41 = vsub.f32 0.0, %v219_v38 }
  0xd0   :  { %v173_v61 = vadd.f32 %v172_v56, %v171_v53 }
  0xd1   :  { %v221_v44 = vmul.f32 1.442695, %v220_v41 }
  0xd2   :  { %v179_v2 = vadd.f32 %v177_v63, %v173_v61 }
  0xd3   :  { %272 = vpow2.f32 %v221_v44 }
  0xdd   :  { %v273_v49 = vpop.eup %272 }
  0xde   :  { %v223_v50 = vadd.f32 1.0, %v273_v49  ;;  %v226_v52 = vmul.f32 -0.5, %v273_v49  ;;  %v229_v55 = vand.u32 2147483647, %v273_v49 }
  0xe0   :  { %274 = vlog2.f32 %v223_v50  ;;  %v227_v54 = vadd.f32 1.0, %v226_v52  ;;  %vm230_vm1 = vcmp.lt.f32.partialorder %v229_v55, 0.0004427343 }
  0xe2   :  { %v228_v59 = vmul.f32 %v273_v49, %v227_v54 }
  0xea   :  { %v275_v57 = vpop.eup %274 }
  0xeb   :  { %v225_v58 = vmul.f32 0.6931472, %v275_v57 }
  0xed   :  { %v231_v62 = vsel %vm230_vm1, %v228_v59, %v225_v58 }
  0xee   :  { %v232_v0 = vadd.f32 %v231_v62, %v218_v60 }
  0xf0   :  { %v234_v1 = vrot.slane %v232_v0, 7 }
  0xf2   :  { %v237_v3 = vsel %vm236_vm2, %v179_v2, %v234_v1 }
  0xf3   :  { %239 = vst.msk [vmem:[%s344_s3] sm:$0x3] %vm238_vm3, %v237_v3 }

</bundles_post_ra>
